<compile_context>
chip_gen: v7x
topology: tpu7x:2x2x1
jax: 0.10.0
libtpu: 0.0.40
codegen_flags: <defaults>
</compile_context>

<pallas_src>
import math

import jax
import jax.numpy as jnp
from jax.experimental import pallas as pl
from jax.experimental.pallas import tpu as pltpu


def _seqs_per_block(S0, S1, target_rows):
    """# of whole sequences per grid step (TB).  Keeps the in-kernel
    (R,Dh)<->(TB,S1,Dh) reshapes layout-trivial (S1 % 8 == 0 whenever TB > 1)
    and TB dividing S0."""
    if S1 % 8 != 0:
        return 1
    limit = min(max(1, target_rows // S1), S0)
    for tb in range(limit, 0, -1):
        if S0 % tb == 0:
            return tb
    return 1


def _make_kernel(TB, S1, H, Dh, EP):
    R = TB * S1                # rows fed to the MXU per grid step
    E = H * Dh
    # Guard from the review's correctness note: the per-head reshapes below are
    # only layout no-ops (row-dim split/collapse) if this holds.
    assert TB == 1 or S1 % 8 == 0, "TB > 1 requires S1 % 8 == 0"

    def kernel(x_ref, wqkv_ref, bqkv_ref, wo_ref, bo_ref, o_ref):
        x = x_ref[...]                                     # (R, E) bf16

        # Fused QKV projection: one (R,E)x(E,3E) bf16 MXU matmul, f32 accum.
        # 1/sqrt(Dh) is pre-folded into the Q columns / bias by the wrapper.
        qkv = jnp.dot(x, wqkv_ref[...],
                      preferred_element_type=jnp.float32) + bqkv_ref[...]

        # Split Q/K/V once (3 wide slices instead of 3 per head).
        q_all = qkv[:, :E]
        k_all = qkv[:, E:2 * E]
        v_all = qkv[:, 2 * E:]

        # Output projection accumulated per head into a lane-dense (R, EP=128k)
        # f32 slab: no H-way lane concat, unmasked output store.
        acc = jnp.zeros((R, EP), jnp.float32)
        for h in range(H):                                 # H is small & static
            lo, hi = h * Dh, (h + 1) * Dh
            # Slices/reshapes stay in f32 (layout-trivial, row-dim only); casts
            # to bf16 happen right before each MXU matmul.
            q = q_all[:, lo:hi].reshape(TB, S1, Dh).astype(jnp.bfloat16)
            k = k_all[:, lo:hi].reshape(TB, S1, Dh).astype(jnp.bfloat16)
            v = v_all[:, lo:hi].reshape(TB, S1, Dh).astype(jnp.bfloat16)

            # Scores batched over the TB sequences in this tile (bf16 MXU).
            s = jnp.einsum('bqd,bkd->bqk', q, k,
                           preferred_element_type=jnp.float32)
            s = s - jnp.max(s, axis=-1, keepdims=True)
            p = jnp.exp(s)
            d = jnp.sum(p, axis=-1, keepdims=True)
            # EUP reciprocal (free slot) + one Newton step -> near-exact divide.
            r = pl.reciprocal(d, approx=True)
            r = r * (2.0 - d * r)
            p = (p * r).astype(jnp.bfloat16)

            o = jnp.einsum('bqk,bkd->bqd', p, v,
                           preferred_element_type=jnp.float32)   # (TB,S1,Dh) f32
            o = o.reshape(R, Dh).astype(jnp.bfloat16)
            # Per-head slab of the (padded) output projection, pre-split in the
            # wrapper: wo_ref[h] is (Dh, EP) bf16.
            acc = acc + jnp.dot(o, wo_ref[h],
                                preferred_element_type=jnp.float32)

        out = acc + bo_ref[...]                            # (R, EP) f32
        o_ref[...] = out.astype(o_ref.dtype)               # lane-dense store

    return kernel


def _prepare_params(params, num_heads, ep):
    """Fold PyTorch-style MHA params into kernel-friendly fused operands."""
    in_w, in_b, out_w, out_b = params            # (3E,E), (3E,), (E,E), (E,)
    E = out_w.shape[0]
    Dh = E // num_heads
    scale = 1.0 / math.sqrt(Dh)
    wq, wk, wv = in_w[:E], in_w[E:2 * E], in_w[2 * E:]
    bq, bk, bv = in_b[:E], in_b[E:2 * E], in_b[2 * E:]
    # Fold the softmax scale into the Q projection; weights pre-transposed so
    # projections are `x @ W`; bf16 for the MXU.
    wqkv = jnp.concatenate([wq.T * scale, wk.T, wv.T],
                           axis=1).astype(jnp.bfloat16)               # (E, 3E)
    bqkv = jnp.concatenate([bq * scale, bk, bv]).reshape(1, 3 * E)    # (1, 3E) f32
    # Output projection: zero-pad columns to EP lanes (lane-dense store) and
    # pre-split rows per head -> (H, Dh, EP) bf16.
    wo = out_w.T                                                      # (E, E)
    if ep != E:
        wo = jnp.pad(wo, ((0, 0), (0, ep - E)))
    wo = wo.reshape(num_heads, Dh, ep).astype(jnp.bfloat16)
    bo = out_b
    if ep != E:
        bo = jnp.pad(bo, (0, ep - E))
    bo = bo.reshape(1, ep).astype(jnp.float32)
    return wqkv, bqkv, wo, bo


def multihead_attention_forward(x, params, num_heads, target_rows=512):
    """x: (dim0, dim1, embed) float32 -> same shape/dtype.
    target_rows ~ MXU row tile (512+ for v6e/v7x; use 128 on v5e)."""
    S0, S1, E = x.shape
    assert E % num_heads == 0
    Dh = E // num_heads
    EP = pl.cdiv(E, 128) * 128            # lane-dense (zero-padded) output width

    wqkv, bqkv, wo, bo = _prepare_params(params, num_heads, EP)

    TB = _seqs_per_block(S0, S1, target_rows)
    R = TB * S1
    kernel = _make_kernel(TB, S1, num_heads, Dh, EP)

    # Fold dim0 into the matmul row dim at the boundary and feed the kernel
    # bf16 activations (halves x HBM traffic; f32 accumulation inside).
    x2 = x.reshape(S0 * S1, E).astype(jnp.bfloat16)

    grid_spec = pltpu.PrefetchScalarGridSpec(
        num_scalar_prefetch=0,
        grid=(S0 // TB,),
        in_specs=[
            pl.BlockSpec((R, E), lambda i: (i, 0)),                  # x rows
            pl.BlockSpec((E, 3 * E), lambda i: (0, 0)),              # fused Wqkv
            pl.BlockSpec((1, 3 * E), lambda i: (0, 0)),              # fused bqkv
            pl.BlockSpec((num_heads, Dh, EP), lambda i: (0, 0, 0)),  # Wo per head
            pl.BlockSpec((1, EP), lambda i: (0, 0)),                 # bo (padded)
        ],
        out_specs=pl.BlockSpec((R, EP), lambda i: (i, 0)),
    )

    # TODO(synk): on v7x use pltpu.CORE_PARALLEL (2 TCs) / cap TB at S0//2 and
    # add pipeline_mode=pl.Buffered(1) to the grid-invariant weight specs.
    out = pl.pallas_call(
        kernel,
        out_shape=jax.ShapeDtypeStruct((S0 * S1, EP), x.dtype),
        grid_spec=grid_spec,
        compiler_params=pltpu.CompilerParams(
            dimension_semantics=("parallel",),
            vmem_limit_bytes=48 * 1024 * 1024),
    )(x2, wqkv, bqkv, wo, bo)

    if EP != E:
        out = out[:, :E]
    return out.reshape(S0, S1, E)


def init_params(key, embed_dim):
    """nn.MultiheadAttention-shaped params: in_proj_weight (3E,E) xavier_uniform,
    in_proj_bias (3E,), out_proj weight (E,E) / bias (E,).  Biases are small
    random values so the bias path (incl. the folded scale on bq) is exercised."""
    k1, k2, k3, k4 = jax.random.split(key, 4)
    lim_in = math.sqrt(6.0 / (3 * embed_dim + embed_dim))
    in_w = jax.random.uniform(k1, (3 * embed_dim, embed_dim),
                              jnp.float32, -lim_in, lim_in)
    in_b = 0.02 * jax.random.normal(k2, (3 * embed_dim,), jnp.float32)
    lim_out = 1.0 / math.sqrt(embed_dim)
    out_w = jax.random.uniform(k3, (embed_dim, embed_dim),
                               jnp.float32, -lim_out, lim_out)
    out_b = 0.02 * jax.random.normal(k4, (embed_dim,), jnp.float32)
    return in_w, in_b, out_w, out_b


def reference_forward(x, params, num_heads):
    """Pure-JAX f32 replica of nn.MultiheadAttention forward (permutes cancel)."""
    in_w, in_b, out_w, out_b = params
    S0, S1, E = x.shape
    Dh = E // num_heads
    wq, wk, wv = in_w[:E], in_w[E:2 * E], in_w[2 * E:]
    bq, bk, bv = in_b[:E], in_b[E:2 * E], in_b[2 * E:]
    q = (x @ wq.T + bq).reshape(S0, S1, num_heads, Dh)
    k = (x @ wk.T + bk).reshape(S0, S1, num_heads, Dh)
    v = (x @ wv.T + bv).reshape(S0, S1, num_heads, Dh)
    s = jnp.einsum("nlhd,nmhd->nhlm", q, k) / math.sqrt(Dh)
    p = jax.nn.softmax(s, axis=-1)
    o = jnp.einsum("nhlm,nmhd->nlhd", p, v).reshape(S0, S1, E)
    return o @ out_w.T + out_b


if __name__ == "__main__":
    embed_dim = 32
    num_heads = 4
    dim0, dim1 = 2, 8   # x exactly as the PyTorch module receives it

    key = jax.random.PRNGKey(0)
    kx, kp = jax.random.split(key)
    x = jax.random.normal(kx, (dim0, dim1, embed_dim), dtype=jnp.float32)
    params = init_params(kp, embed_dim)

    out = multihead_attention_forward(x, params, num_heads)
    out = jax.block_until_ready(out)

    ref = reference_forward(x, params, num_heads)
    assert out.shape == x.shape
    # Tolerance accounts for bf16 MXU operands (f32 accumulation) vs. the pure
    # f32 reference; softmax normalization itself is Newton-refined (near-exact).
    err = float(jnp.max(jnp.abs(out - ref)))
    assert err < 5e-2, f"mismatch vs reference: max abs err {err}"

    print("KERNEL_OK")
</pallas_src>

<mosaic_0001>
module attributes {stable_mosaic.version = 11 : i64} {
  func.func @kernel(%arg0: i32, %arg1: memref<16x32xbf16, #tpu.memory_space<vmem>>, %arg2: memref<32x96xbf16, #tpu.memory_space<vmem>>, %arg3: memref<1x96xf32, #tpu.memory_space<vmem>>, %arg4: memref<4x8x128xbf16, #tpu.memory_space<vmem>>, %arg5: memref<1x128xf32, #tpu.memory_space<vmem>>, %arg6: memref<16x128xf32, #tpu.memory_space<vmem>>) attributes {dimension_semantics = [#tpu.dimension_semantics<parallel>], iteration_bounds = array<i64: 1>, scalar_prefetch = 0 : i64, scratch_operands = 0 : i64, tpu.core_type = #tpu.core_type<tc>, window_params = [{transform_indices = @transform_0, window_bounds = array<i64: 16, 32>}, {pipeline_mode = #tpu.pipeline_mode<synchronous>, transform_indices = @transform_1, window_bounds = array<i64: 32, 96>}, {pipeline_mode = #tpu.pipeline_mode<synchronous>, transform_indices = @transform_2, window_bounds = array<i64: 1, 96>}, {pipeline_mode = #tpu.pipeline_mode<synchronous>, transform_indices = @transform_3, window_bounds = array<i64: 4, 8, 128>}, {pipeline_mode = #tpu.pipeline_mode<synchronous>, transform_indices = @transform_4, window_bounds = array<i64: 1, 128>}, {transform_indices = @transform_5, window_bounds = array<i64: 16, 128>}]} {
    %c0 = arith.constant 0 : index
    %c0_0 = arith.constant 0 : index
    %0 = vector.load %arg1[%c0, %c0_0] : memref<16x32xbf16, #tpu.memory_space<vmem>>, vector<16x32xbf16>
    %c0_1 = arith.constant 0 : index
    %c0_2 = arith.constant 0 : index
    %1 = vector.load %arg2[%c0_1, %c0_2] : memref<32x96xbf16, #tpu.memory_space<vmem>>, vector<32x96xbf16>
    %cst = arith.constant dense<0.000000e+00> : vector<16x96xf32>
    %2 = tpu.matmul %0, %1, %cst {dimension_numbers = #tpu.dot_dimension_numbers<[1], [0], [0], [1], [0, 0, 1, 1], [], []>} : vector<16x32xbf16>, vector<32x96xbf16>, vector<16x96xf32> -> vector<16x96xf32>
    %c0_3 = arith.constant 0 : index
    %c0_4 = arith.constant 0 : index
    %3 = vector.load %arg3[%c0_3, %c0_4] : memref<1x96xf32, #tpu.memory_space<vmem>>, vector<1x96xf32>
    %4 = vector.broadcast %3 : vector<1x96xf32> to vector<16x96xf32>
    %5 = arith.addf %2, %4 : vector<16x96xf32>
    %6 = vector.extract_strided_slice %5 {offsets = [0, 0], sizes = [16, 32], strides = [1, 1]} : vector<16x96xf32> to vector<16x32xf32>
    %7 = vector.extract_strided_slice %5 {offsets = [0, 32], sizes = [16, 32], strides = [1, 1]} : vector<16x96xf32> to vector<16x32xf32>
    %8 = vector.extract_strided_slice %5 {offsets = [0, 64], sizes = [16, 32], strides = [1, 1]} : vector<16x96xf32> to vector<16x32xf32>
    %cst_5 = arith.constant 0.000000e+00 : f32
    %9 = vector.broadcast %cst_5 : f32 to vector<16x128xf32>
    %10 = vector.extract_strided_slice %6 {offsets = [0, 0], sizes = [16, 8], strides = [1, 1]} : vector<16x32xf32> to vector<16x8xf32>
    %11 = vector.shape_cast %10 : vector<16x8xf32> to vector<2x8x8xf32>
    %12 = arith.truncf %11 : vector<2x8x8xf32> to vector<2x8x8xbf16>
    %13 = vector.extract_strided_slice %7 {offsets = [0, 0], sizes = [16, 8], strides = [1, 1]} : vector<16x32xf32> to vector<16x8xf32>
    %14 = vector.shape_cast %13 : vector<16x8xf32> to vector<2x8x8xf32>
    %15 = arith.truncf %14 : vector<2x8x8xf32> to vector<2x8x8xbf16>
    %16 = vector.extract_strided_slice %8 {offsets = [0, 0], sizes = [16, 8], strides = [1, 1]} : vector<16x32xf32> to vector<16x8xf32>
    %17 = vector.shape_cast %16 : vector<16x8xf32> to vector<2x8x8xf32>
    %18 = arith.truncf %17 : vector<2x8x8xf32> to vector<2x8x8xbf16>
    "tpu.trace_start"() <{level = 10 : i32, message = "bqd,bkd->bqk"}> : () -> ()
    %cst_6 = arith.constant dense<0.000000e+00> : vector<2x8x8xf32>
    %19 = tpu.matmul %12, %15, %cst_6 {dimension_numbers = #tpu.dot_dimension_numbers<[2], [2], [1], [1], [0, 0, 0, 1, 1, 1], [0], [0]>} : vector<2x8x8xbf16>, vector<2x8x8xbf16>, vector<2x8x8xf32> -> vector<2x8x8xf32>
    "tpu.trace_stop"() : () -> ()
    %cst_7 = arith.constant dense<0xFF800000> : vector<2x8xf32>
    %20 = vector.multi_reduction <maximumf>, %19, %cst_7 [2] : vector<2x8x8xf32> to vector<2x8xf32>
    %21 = vector.shape_cast %20 : vector<2x8xf32> to vector<2x8x1xf32>
    %22 = vector.broadcast %21 : vector<2x8x1xf32> to vector<2x8x8xf32>
    %23 = arith.subf %19, %22 : vector<2x8x8xf32>
    %24 = math.exp %23 : vector<2x8x8xf32>
    %cst_8 = arith.constant dense<0.000000e+00> : vector<2x8xf32>
    %25 = vector.multi_reduction <add>, %24, %cst_8 [2] : vector<2x8x8xf32> to vector<2x8xf32>
    %26 = vector.shape_cast %25 : vector<2x8xf32> to vector<2x8x1xf32>
    %27 = tpu.reciprocal %26 {approx = true} : vector<2x8x1xf32> -> vector<2x8x1xf32>
    %28 = arith.mulf %26, %27 : vector<2x8x1xf32>
    %cst_9 = arith.constant 2.000000e+00 : f32
    %29 = vector.broadcast %cst_9 : f32 to vector<2x8x1xf32>
    %30 = arith.subf %29, %28 : vector<2x8x1xf32>
    %31 = arith.mulf %27, %30 : vector<2x8x1xf32>
    %32 = vector.broadcast %31 : vector<2x8x1xf32> to vector<2x8x8xf32>
    %33 = arith.mulf %24, %32 : vector<2x8x8xf32>
    %34 = arith.truncf %33 : vector<2x8x8xf32> to vector<2x8x8xbf16>
    "tpu.trace_start"() <{level = 10 : i32, message = "bqk,bkd->bqd"}> : () -> ()
    %cst_10 = arith.constant dense<0.000000e+00> : vector<2x8x8xf32>
    %35 = tpu.matmul %34, %18, %cst_10 {dimension_numbers = #tpu.dot_dimension_numbers<[2], [1], [1], [2], [0, 0, 0, 1, 1, 2], [0], [0]>} : vector<2x8x8xbf16>, vector<2x8x8xbf16>, vector<2x8x8xf32> -> vector<2x8x8xf32>
    "tpu.trace_stop"() : () -> ()
    %36 = vector.shape_cast %35 : vector<2x8x8xf32> to vector<16x8xf32>
    %37 = arith.truncf %36 : vector<16x8xf32> to vector<16x8xbf16>
    %c0_11 = arith.constant 0 : index
    %c0_12 = arith.constant 0 : index
    %c0_13 = arith.constant 0 : index
    %38 = vector.load %arg4[%c0_11, %c0_12, %c0_13] : memref<4x8x128xbf16, #tpu.memory_space<vmem>>, vector<1x8x128xbf16>
    %39 = vector.shape_cast %38 : vector<1x8x128xbf16> to vector<8x128xbf16>
    %cst_14 = arith.constant dense<0.000000e+00> : vector<16x128xf32>
    %40 = tpu.matmul %37, %39, %cst_14 {dimension_numbers = #tpu.dot_dimension_numbers<[1], [0], [0], [1], [0, 0, 1, 1], [], []>} : vector<16x8xbf16>, vector<8x128xbf16>, vector<16x128xf32> -> vector<16x128xf32>
    %41 = arith.addf %9, %40 : vector<16x128xf32>
    %42 = vector.extract_strided_slice %6 {offsets = [0, 8], sizes = [16, 8], strides = [1, 1]} : vector<16x32xf32> to vector<16x8xf32>
    %43 = vector.shape_cast %42 : vector<16x8xf32> to vector<2x8x8xf32>
    %44 = arith.truncf %43 : vector<2x8x8xf32> to vector<2x8x8xbf16>
    %45 = vector.extract_strided_slice %7 {offsets = [0, 8], sizes = [16, 8], strides = [1, 1]} : vector<16x32xf32> to vector<16x8xf32>
    %46 = vector.shape_cast %45 : vector<16x8xf32> to vector<2x8x8xf32>
    %47 = arith.truncf %46 : vector<2x8x8xf32> to vector<2x8x8xbf16>
    %48 = vector.extract_strided_slice %8 {offsets = [0, 8], sizes = [16, 8], strides = [1, 1]} : vector<16x32xf32> to vector<16x8xf32>
    %49 = vector.shape_cast %48 : vector<16x8xf32> to vector<2x8x8xf32>
    %50 = arith.truncf %49 : vector<2x8x8xf32> to vector<2x8x8xbf16>
    "tpu.trace_start"() <{level = 10 : i32, message = "bqd,bkd->bqk"}> : () -> ()
    %cst_15 = arith.constant dense<0.000000e+00> : vector<2x8x8xf32>
    %51 = tpu.matmul %44, %47, %cst_15 {dimension_numbers = #tpu.dot_dimension_numbers<[2], [2], [1], [1], [0, 0, 0, 1, 1, 1], [0], [0]>} : vector<2x8x8xbf16>, vector<2x8x8xbf16>, vector<2x8x8xf32> -> vector<2x8x8xf32>
    "tpu.trace_stop"() : () -> ()
    %cst_16 = arith.constant dense<0xFF800000> : vector<2x8xf32>
    %52 = vector.multi_reduction <maximumf>, %51, %cst_16 [2] : vector<2x8x8xf32> to vector<2x8xf32>
    %53 = vector.shape_cast %52 : vector<2x8xf32> to vector<2x8x1xf32>
    %54 = vector.broadcast %53 : vector<2x8x1xf32> to vector<2x8x8xf32>
    %55 = arith.subf %51, %54 : vector<2x8x8xf32>
    %56 = math.exp %55 : vector<2x8x8xf32>
    %cst_17 = arith.constant dense<0.000000e+00> : vector<2x8xf32>
    %57 = vector.multi_reduction <add>, %56, %cst_17 [2] : vector<2x8x8xf32> to vector<2x8xf32>
    %58 = vector.shape_cast %57 : vector<2x8xf32> to vector<2x8x1xf32>
    %59 = tpu.reciprocal %58 {approx = true} : vector<2x8x1xf32> -> vector<2x8x1xf32>
    %60 = arith.mulf %58, %59 : vector<2x8x1xf32>
    %cst_18 = arith.constant 2.000000e+00 : f32
    %61 = vector.broadcast %cst_18 : f32 to vector<2x8x1xf32>
    %62 = arith.subf %61, %60 : vector<2x8x1xf32>
    %63 = arith.mulf %59, %62 : vector<2x8x1xf32>
    %64 = vector.broadcast %63 : vector<2x8x1xf32> to vector<2x8x8xf32>
    %65 = arith.mulf %56, %64 : vector<2x8x8xf32>
    %66 = arith.truncf %65 : vector<2x8x8xf32> to vector<2x8x8xbf16>
    "tpu.trace_start"() <{level = 10 : i32, message = "bqk,bkd->bqd"}> : () -> ()
    %cst_19 = arith.constant dense<0.000000e+00> : vector<2x8x8xf32>
    %67 = tpu.matmul %66, %50, %cst_19 {dimension_numbers = #tpu.dot_dimension_numbers<[2], [1], [1], [2], [0, 0, 0, 1, 1, 2], [0], [0]>} : vector<2x8x8xbf16>, vector<2x8x8xbf16>, vector<2x8x8xf32> -> vector<2x8x8xf32>
    "tpu.trace_stop"() : () -> ()
    %68 = vector.shape_cast %67 : vector<2x8x8xf32> to vector<16x8xf32>
    %69 = arith.truncf %68 : vector<16x8xf32> to vector<16x8xbf16>
    %c1 = arith.constant 1 : index
    %c0_20 = arith.constant 0 : index
    %c0_21 = arith.constant 0 : index
    %70 = vector.load %arg4[%c1, %c0_20, %c0_21] : memref<4x8x128xbf16, #tpu.memory_space<vmem>>, vector<1x8x128xbf16>
    %71 = vector.shape_cast %70 : vector<1x8x128xbf16> to vector<8x128xbf16>
    %cst_22 = arith.constant dense<0.000000e+00> : vector<16x128xf32>
    %72 = tpu.matmul %69, %71, %cst_22 {dimension_numbers = #tpu.dot_dimension_numbers<[1], [0], [0], [1], [0, 0, 1, 1], [], []>} : vector<16x8xbf16>, vector<8x128xbf16>, vector<16x128xf32> -> vector<16x128xf32>
    %73 = arith.addf %41, %72 : vector<16x128xf32>
    %74 = vector.extract_strided_slice %6 {offsets = [0, 16], sizes = [16, 8], strides = [1, 1]} : vector<16x32xf32> to vector<16x8xf32>
    %75 = vector.shape_cast %74 : vector<16x8xf32> to vector<2x8x8xf32>
    %76 = arith.truncf %75 : vector<2x8x8xf32> to vector<2x8x8xbf16>
    %77 = vector.extract_strided_slice %7 {offsets = [0, 16], sizes = [16, 8], strides = [1, 1]} : vector<16x32xf32> to vector<16x8xf32>
    %78 = vector.shape_cast %77 : vector<16x8xf32> to vector<2x8x8xf32>
    %79 = arith.truncf %78 : vector<2x8x8xf32> to vector<2x8x8xbf16>
    %80 = vector.extract_strided_slice %8 {offsets = [0, 16], sizes = [16, 8], strides = [1, 1]} : vector<16x32xf32> to vector<16x8xf32>
    %81 = vector.shape_cast %80 : vector<16x8xf32> to vector<2x8x8xf32>
    %82 = arith.truncf %81 : vector<2x8x8xf32> to vector<2x8x8xbf16>
    "tpu.trace_start"() <{level = 10 : i32, message = "bqd,bkd->bqk"}> : () -> ()
    %cst_23 = arith.constant dense<0.000000e+00> : vector<2x8x8xf32>
    %83 = tpu.matmul %76, %79, %cst_23 {dimension_numbers = #tpu.dot_dimension_numbers<[2], [2], [1], [1], [0, 0, 0, 1, 1, 1], [0], [0]>} : vector<2x8x8xbf16>, vector<2x8x8xbf16>, vector<2x8x8xf32> -> vector<2x8x8xf32>
    "tpu.trace_stop"() : () -> ()
    %cst_24 = arith.constant dense<0xFF800000> : vector<2x8xf32>
    %84 = vector.multi_reduction <maximumf>, %83, %cst_24 [2] : vector<2x8x8xf32> to vector<2x8xf32>
    %85 = vector.shape_cast %84 : vector<2x8xf32> to vector<2x8x1xf32>
    %86 = vector.broadcast %85 : vector<2x8x1xf32> to vector<2x8x8xf32>
    %87 = arith.subf %83, %86 : vector<2x8x8xf32>
    %88 = math.exp %87 : vector<2x8x8xf32>
    %cst_25 = arith.constant dense<0.000000e+00> : vector<2x8xf32>
    %89 = vector.multi_reduction <add>, %88, %cst_25 [2] : vector<2x8x8xf32> to vector<2x8xf32>
    %90 = vector.shape_cast %89 : vector<2x8xf32> to vector<2x8x1xf32>
    %91 = tpu.reciprocal %90 {approx = true} : vector<2x8x1xf32> -> vector<2x8x1xf32>
    %92 = arith.mulf %90, %91 : vector<2x8x1xf32>
    %cst_26 = arith.constant 2.000000e+00 : f32
    %93 = vector.broadcast %cst_26 : f32 to vector<2x8x1xf32>
    %94 = arith.subf %93, %92 : vector<2x8x1xf32>
    %95 = arith.mulf %91, %94 : vector<2x8x1xf32>
    %96 = vector.broadcast %95 : vector<2x8x1xf32> to vector<2x8x8xf32>
    %97 = arith.mulf %88, %96 : vector<2x8x8xf32>
    %98 = arith.truncf %97 : vector<2x8x8xf32> to vector<2x8x8xbf16>
    "tpu.trace_start"() <{level = 10 : i32, message = "bqk,bkd->bqd"}> : () -> ()
    %cst_27 = arith.constant dense<0.000000e+00> : vector<2x8x8xf32>
    %99 = tpu.matmul %98, %82, %cst_27 {dimension_numbers = #tpu.dot_dimension_numbers<[2], [1], [1], [2], [0, 0, 0, 1, 1, 2], [0], [0]>} : vector<2x8x8xbf16>, vector<2x8x8xbf16>, vector<2x8x8xf32> -> vector<2x8x8xf32>
    "tpu.trace_stop"() : () -> ()
    %100 = vector.shape_cast %99 : vector<2x8x8xf32> to vector<16x8xf32>
    %101 = arith.truncf %100 : vector<16x8xf32> to vector<16x8xbf16>
    %c2 = arith.constant 2 : index
    %c0_28 = arith.constant 0 : index
    %c0_29 = arith.constant 0 : index
    %102 = vector.load %arg4[%c2, %c0_28, %c0_29] : memref<4x8x128xbf16, #tpu.memory_space<vmem>>, vector<1x8x128xbf16>
    %103 = vector.shape_cast %102 : vector<1x8x128xbf16> to vector<8x128xbf16>
    %cst_30 = arith.constant dense<0.000000e+00> : vector<16x128xf32>
    %104 = tpu.matmul %101, %103, %cst_30 {dimension_numbers = #tpu.dot_dimension_numbers<[1], [0], [0], [1], [0, 0, 1, 1], [], []>} : vector<16x8xbf16>, vector<8x128xbf16>, vector<16x128xf32> -> vector<16x128xf32>
    %105 = arith.addf %73, %104 : vector<16x128xf32>
    %106 = vector.extract_strided_slice %6 {offsets = [0, 24], sizes = [16, 8], strides = [1, 1]} : vector<16x32xf32> to vector<16x8xf32>
    %107 = vector.shape_cast %106 : vector<16x8xf32> to vector<2x8x8xf32>
    %108 = arith.truncf %107 : vector<2x8x8xf32> to vector<2x8x8xbf16>
    %109 = vector.extract_strided_slice %7 {offsets = [0, 24], sizes = [16, 8], strides = [1, 1]} : vector<16x32xf32> to vector<16x8xf32>
    %110 = vector.shape_cast %109 : vector<16x8xf32> to vector<2x8x8xf32>
    %111 = arith.truncf %110 : vector<2x8x8xf32> to vector<2x8x8xbf16>
    %112 = vector.extract_strided_slice %8 {offsets = [0, 24], sizes = [16, 8], strides = [1, 1]} : vector<16x32xf32> to vector<16x8xf32>
    %113 = vector.shape_cast %112 : vector<16x8xf32> to vector<2x8x8xf32>
    %114 = arith.truncf %113 : vector<2x8x8xf32> to vector<2x8x8xbf16>
    "tpu.trace_start"() <{level = 10 : i32, message = "bqd,bkd->bqk"}> : () -> ()
    %cst_31 = arith.constant dense<0.000000e+00> : vector<2x8x8xf32>
    %115 = tpu.matmul %108, %111, %cst_31 {dimension_numbers = #tpu.dot_dimension_numbers<[2], [2], [1], [1], [0, 0, 0, 1, 1, 1], [0], [0]>} : vector<2x8x8xbf16>, vector<2x8x8xbf16>, vector<2x8x8xf32> -> vector<2x8x8xf32>
    "tpu.trace_stop"() : () -> ()
    %cst_32 = arith.constant dense<0xFF800000> : vector<2x8xf32>
    %116 = vector.multi_reduction <maximumf>, %115, %cst_32 [2] : vector<2x8x8xf32> to vector<2x8xf32>
    %117 = vector.shape_cast %116 : vector<2x8xf32> to vector<2x8x1xf32>
    %118 = vector.broadcast %117 : vector<2x8x1xf32> to vector<2x8x8xf32>
    %119 = arith.subf %115, %118 : vector<2x8x8xf32>
    %120 = math.exp %119 : vector<2x8x8xf32>
    %cst_33 = arith.constant dense<0.000000e+00> : vector<2x8xf32>
    %121 = vector.multi_reduction <add>, %120, %cst_33 [2] : vector<2x8x8xf32> to vector<2x8xf32>
    %122 = vector.shape_cast %121 : vector<2x8xf32> to vector<2x8x1xf32>
    %123 = tpu.reciprocal %122 {approx = true} : vector<2x8x1xf32> -> vector<2x8x1xf32>
    %124 = arith.mulf %122, %123 : vector<2x8x1xf32>
    %cst_34 = arith.constant 2.000000e+00 : f32
    %125 = vector.broadcast %cst_34 : f32 to vector<2x8x1xf32>
    %126 = arith.subf %125, %124 : vector<2x8x1xf32>
    %127 = arith.mulf %123, %126 : vector<2x8x1xf32>
    %128 = vector.broadcast %127 : vector<2x8x1xf32> to vector<2x8x8xf32>
    %129 = arith.mulf %120, %128 : vector<2x8x8xf32>
    %130 = arith.truncf %129 : vector<2x8x8xf32> to vector<2x8x8xbf16>
    "tpu.trace_start"() <{level = 10 : i32, message = "bqk,bkd->bqd"}> : () -> ()
    %cst_35 = arith.constant dense<0.000000e+00> : vector<2x8x8xf32>
    %131 = tpu.matmul %130, %114, %cst_35 {dimension_numbers = #tpu.dot_dimension_numbers<[2], [1], [1], [2], [0, 0, 0, 1, 1, 2], [0], [0]>} : vector<2x8x8xbf16>, vector<2x8x8xbf16>, vector<2x8x8xf32> -> vector<2x8x8xf32>
    "tpu.trace_stop"() : () -> ()
    %132 = vector.shape_cast %131 : vector<2x8x8xf32> to vector<16x8xf32>
    %133 = arith.truncf %132 : vector<16x8xf32> to vector<16x8xbf16>
    %c3 = arith.constant 3 : index
    %c0_36 = arith.constant 0 : index
    %c0_37 = arith.constant 0 : index
    %134 = vector.load %arg4[%c3, %c0_36, %c0_37] : memref<4x8x128xbf16, #tpu.memory_space<vmem>>, vector<1x8x128xbf16>
    %135 = vector.shape_cast %134 : vector<1x8x128xbf16> to vector<8x128xbf16>
    %cst_38 = arith.constant dense<0.000000e+00> : vector<16x128xf32>
    %136 = tpu.matmul %133, %135, %cst_38 {dimension_numbers = #tpu.dot_dimension_numbers<[1], [0], [0], [1], [0, 0, 1, 1], [], []>} : vector<16x8xbf16>, vector<8x128xbf16>, vector<16x128xf32> -> vector<16x128xf32>
    %137 = arith.addf %105, %136 : vector<16x128xf32>
    %c0_39 = arith.constant 0 : index
    %c0_40 = arith.constant 0 : index
    %138 = vector.load %arg5[%c0_39, %c0_40] : memref<1x128xf32, #tpu.memory_space<vmem>>, vector<1x128xf32>
    %139 = vector.broadcast %138 : vector<1x128xf32> to vector<16x128xf32>
    %140 = arith.addf %137, %139 : vector<16x128xf32>
    %c0_41 = arith.constant 0 : index
    %c0_42 = arith.constant 0 : index
    %141 = vector.load %arg6[%c0_41, %c0_42] : memref<16x128xf32, #tpu.memory_space<vmem>>, vector<16x128xf32>
    tpu.vector_store %arg6[%c0_41, %c0_42], %140 {strides = array<i32>} : memref<16x128xf32, #tpu.memory_space<vmem>>, vector<16x128xf32>,
    return
  }
  func.func @transform_0(%arg0: i32) -> (i32, i32) {
    %c0_i32 = arith.constant 0 : i32
    %c0_i32_0 = arith.constant 0 : i32
    return %arg0, %c0_i32 : i32, i32
  }
  func.func @transform_1(%arg0: i32) -> (i32, i32) {
    %c0_i32 = arith.constant 0 : i32
    %c0_i32_0 = arith.constant 0 : i32
    %c0_i32_1 = arith.constant 0 : i32
    return %c0_i32, %c0_i32_0 : i32, i32
  }
  func.func @transform_2(%arg0: i32) -> (i32, i32) {
    %c0_i32 = arith.constant 0 : i32
    %c0_i32_0 = arith.constant 0 : i32
    %c0_i32_1 = arith.constant 0 : i32
    return %c0_i32, %c0_i32_0 : i32, i32
  }
  func.func @transform_3(%arg0: i32) -> (i32, i32, i32) {
    %c0_i32 = arith.constant 0 : i32
    %c0_i32_0 = arith.constant 0 : i32
    %c0_i32_1 = arith.constant 0 : i32
    %c0_i32_2 = arith.constant 0 : i32
    return %c0_i32, %c0_i32_0, %c0_i32_1 : i32, i32, i32
  }
  func.func @transform_4(%arg0: i32) -> (i32, i32) {
    %c0_i32 = arith.constant 0 : i32
    %c0_i32_0 = arith.constant 0 : i32
    %c0_i32_1 = arith.constant 0 : i32
    return %c0_i32, %c0_i32_0 : i32, i32
  }
  func.func @transform_5(%arg0: i32) -> (i32, i32) {
    %c0_i32 = arith.constant 0 : i32
    %c0_i32_0 = arith.constant 0 : i32
    return %arg0, %c0_i32 : i32, i32
  }
}

</mosaic_0001>

<bundles_post_ra>
// kernel: tpu_custom_call.1
= control target key start
LH: loop header
LB: loop body
LE: loop exit
PB: predicated region body
PF: predicated region fallthrough
CT: control target
= control target key end

     0   :  { %10 = vsyncpa [#allocation3], 0  ;;  %s1914_s0 = inlined_call_operand.hbm [shape: bf16[16,32], index: 0, kind: input, shape index: {}]   ;;  %s1915_s1 = inlined_call_operand.hbm [shape: bf16[32,96], index: 1, kind: input, shape index: {}]   ;;  %s1916_s2 = inlined_call_operand.vmem [shape: f32[1,96], index: 2, kind: input, shape index: {}]   ;;  %s1917_s3 = inlined_call_operand.hbm [shape: bf16[4,8,128], index: 3, kind: input, shape index: {}]   ;;  %s1918_s4 = inlined_call_operand.vmem [shape: f32[1,128], index: 4, kind: input, shape index: {}]   ;;  %s1919_s5 = inlined_call_operand.hbm [shape: f32[16,128], index: 5, kind: output, shape index: {}]  }
   0x1   :  { %11 = vsyncpa [#allocation6], 0 }
   0x2   :  { %12 = vsyncpa [#allocation4], 0  ;;  %s1622_s18 = smov [#allocation5]   ;;  %s1623_s20 = smov [#allocation2]  }
   0x3   :  { %s30_s19 = sshll.u32 %s1622_s18, 4  ;;  %s18_s21 = sshll.u32 %s1623_s20, 4  ;;  %s31_s19 = int_to_ptr.vmem [resolvable:$true] %s30_s19  ;;  %s1672_s21 = int_to_ptr.vmem [resolvable:$true] %s18_s21 }
   0x4   :  { %s1528_s24 = scalar_lea.hbm %s1915_s1, 256 }
   0x5   :  { %p1529_p0 = scmp.ne.s32.totalorder %s1915_s1, %s1528_s24  ;;  %p1532_p1 = scmp.lt.u32.totalorder %s1528_s24, %s1915_s1 }
   0x7   :  { %p1534_p2 = pnand %p1532_p1, %p1529_p0 }
   0x9   :  { %1537 = shalt.err (!%p1534_p2)
}
   0xa   :  { %s1538_s29 = scalar_lea.vmem %s31_s19, 256  ;;  %p1543_p4 = scmp.lt.s32.totalorder %s31_s19, %s31_s19 }
   0xb   :  { %p1539_p3 = scmp.ne.s32.totalorder %s31_s19, %s1538_s29  ;;  %p1544_p5 = scmp.lt.s32.totalorder %s1538_s29, %s1538_s29 }
   0xd   :  { %p1545_p6 = por %p1544_p5, %p1543_p4 }
   0xf   :  { %p1546_p7 = pnand %p1545_p6, %p1539_p3 }
  0x11   :  { %1549 = shalt.err (!%p1546_p7)
}
  0x12   :  { %s1624_s30 = smov 64   ;;  %s1625_s6 = smov 4  }
  0x13   :  { %36 = dma.hbm_to_vmem [thread:$0]  %s1915_s1, 256, %s31_s19, [#allocation6], %s1624_s30, %s1624_s30, %s1625_s6  }
  0x14   :  { %s1550_s11 = scalar_lea.hbm %s1914_s0, 128 }
  0x15   :  { %p1551_p8 = scmp.ne.s32.totalorder %s1914_s0, %s1550_s11  ;;  %p1554_p9 = scmp.lt.u32.totalorder %s1550_s11, %s1914_s0 }
  0x17   :  { %p1556_p10 = pnand %p1554_p9, %p1551_p8 }
  0x19   :  { %1559 = shalt.err (!%p1556_p10)
}
  0x1a   :  { %s1560_s16 = scalar_lea.vmem %s1672_s21, 128  ;;  %p1565_p12 = scmp.lt.s32.totalorder %s1672_s21, %s1672_s21 }
  0x1b   :  { %p1561_p11 = scmp.ne.s32.totalorder %s1672_s21, %s1560_s16  ;;  %p1566_p13 = scmp.lt.s32.totalorder %s1560_s16, %s1560_s16 }
  0x1d   :  { %p1567_p0 = por %p1566_p13, %p1565_p12 }
  0x1f   :  { %p1568_p1 = pnand %p1567_p0, %p1561_p11 }
  0x21   :  { %1571 = shalt.err (!%p1568_p1)
}
  0x22   :  { %24 = dma.hbm_to_vmem [thread:$0]  %s1914_s0, 128, %s1672_s21, [#allocation3], %s1624_s30, %s1624_s30, %s1625_s6  }
  0x23   :  { %s1626_s18 = smov [#allocation7]   ;;  %s1572_s23 = scalar_lea.hbm %s1917_s3, 256 }
  0x24   :  { %s44_s19 = sshll.u32 %s1626_s18, 4  ;;  %p1573_p2 = scmp.ne.s32.totalorder %s1917_s3, %s1572_s23  ;;  %s45_s19 = int_to_ptr.vmem [resolvable:$true] %s44_s19 }
  0x25   :  { %p1576_p3 = scmp.lt.u32.totalorder %s1572_s23, %s1917_s3 }
  0x27   :  { %p1578_p4 = pnand %p1576_p3, %p1573_p2 }
  0x29   :  { %1581 = shalt.err (!%p1578_p4)
}
  0x2a   :  { %s1582_s28 = scalar_lea.vmem %s45_s19, 256  ;;  %p1587_p6 = scmp.lt.s32.totalorder %s45_s19, %s45_s19 }
  0x2b   :  { %p1583_p5 = scmp.ne.s32.totalorder %s45_s19, %s1582_s28  ;;  %p1588_p7 = scmp.lt.s32.totalorder %s1582_s28, %s1582_s28 }
  0x2d   :  { %p1589_p8 = por %p1588_p7, %p1587_p6 }
  0x2f   :  { %p1590_p9 = pnand %p1589_p8, %p1583_p5 }
  0x31   :  { %1593 = shalt.err (!%p1590_p9)
}
  0x32   :  { %50 = dma.hbm_to_vmem [thread:$0]  %s1917_s3, 256, %s45_s19, [#allocation6], %s1624_s30, %s1624_s30, %s1625_s6  }
  0x33   :  { %1616 = dma.done.wait [#allocation3], 128  }
  0x34   :  { %1617 = vsyncadd [#allocation3], 4294967168 }
  0x35   :  { %1618 = dma.done.wait [#allocation6], 512  }
  0x36   :  { %1619 = vsyncadd [#allocation6], 4294966784  ;;  %v1627_v0 = vmov 0.0   ;;  %vm1628_vm0 = vmmov 0   ;;  %v1493_v1 = vld [vmem:[#allocation5] sm:$0xff]   ;;  %v1494_v2 = vld [vmem:[#allocation5 + $0x8] sm:$0xff]  }
  0x37   :  { %1345 = vmatprep.subr.bf16.mxu0 %v1627_v0  ;;  %1349 = vmatprep.mubr.msk.bf16.mxu0 %vm1628_vm0, %v1627_v0  ;;  %v1495_v3 = vld [vmem:[#allocation2] sm:$0xff]   ;;  %vm93_vm1 = vcmask 261120   ;;  %s1629_s6 = smov 96   ;;  %vm143_vm2 = vcmask 64512   ;;  %vm274_vm3 = vcmask 1043456   ;;  %s1632_s7 = smov 56  }
  0x38   :  { %1353 = vmatprep.subr.bf16.mxu1 %v1627_v0  ;;  %1355 = vmatprep.mubr.msk.bf16.mxu1 %vm1628_vm0, %v1627_v0  ;;  %v1276_v4 = vld [vmem:[%s1916_s2] ss:$0 sm:$0xff]  ;;  %s1630_s2 = smov 88   ;;  %s1633_s8 = smov 112  }
  0x39   :  { %1346 = vmatpush3.bf16.msra.mxu0 %v1493_v1  ;;  %s1634_s9 = smov 80   ;;  %s1635_s10 = smov 48  }
  0x3a   :  { %1347 = vmatprep.subr.bf16.mxu0 %v1627_v0  ;;  %s1636_s11 = smov 72   ;;  %s1637_s12 = smov 104  }
  0x3b   :  { %s1638_s13 = smov 40   ;;  %s1639_s16 = smov [#allocation8]  }
  0x3c   :  { %s1263_s1 = sshll.u32 %s1639_s16, 4  ;;  %s1264_s1 = int_to_ptr.vmem [resolvable:$true] %s1263_s1 }
  0x3d   :  { %1348 = vmatpush3.bf16.msra.mxu0 %v1494_v2  ;;  %s1594_s17 = scalar_lea.vmem %s1264_s1, 256  ;;  %p1599_p11 = scmp.lt.s32.totalorder %s1264_s1, %s1264_s1 }
  0x3e   :  { %1359 = vmatprep.subr.bf16.mxu0 %v1627_v0  ;;  %p1595_p10 = scmp.ne.s32.totalorder %s1264_s1, %s1594_s17  ;;  %p1600_p12 = scmp.lt.s32.totalorder %s1594_s17, %s1594_s17 }
  0x40   :  { %1350 = vmatmul.mubr.msk.bf16.vlgmr.msra.gmra.mrb[0].mxu0 %vm93_vm1, %v1495_v3  ;;  %p1601_p13 = por %p1600_p12, %p1599_p11 }
  0x41   :  { %1361 = vmatprep.mubr.msk.bf16.mxu0 %vm1628_vm0, %v1627_v0 }
  0x42   :  { %p1602_p0 = pnand %p1601_p13, %p1595_p10 }
 0x113   :  { %v131_v5 = vpop.f32.mrb[0].mxu0 }
 0x114   :  { %v132_v6 = vadd.f32 %v1276_v4, %v131_v5  ;;  %v1351_v7 = vpop.f32.mrb[1].mxu0 }
 0x115   :  { %v134_v8 = vpop.f32.mrb[2].mxu0 }
 0x116   :  { %v1737_v9 = vpack.c.bf16 %v132_v6, %v132_v6  ;;  %v135_v10 = vadd.f32 %v1276_v4, %v134_v8  ;;  %v1352_v11 = vpop.f32.mrb[3].mxu0 }
 0x118   :  { %141 = vrot.lane.b32.xlu0 %v1737_v9, %s1629_s6  ;;  %v1740_v12 = vpack.c.bf16 %v135_v10, %v135_v10 }
 0x11c   :  { %191 = vrot.lane.b32.xlu0 %v1740_v12, %s1629_s6 }
 0x18a   :  { %v142_v13 = vpop.permute.xlu0 %141 }
 0x18b   :  { %v148_v14 = vsel %vm143_vm2, %v142_v13, 0 }
 0x18c   :  { %1354 = vmatpush3.bf16.xpose.msra.mxu1 %v148_v14 }
 0x18d   :  { %1365 = vmatprep.subr.bf16.mxu1 %v1627_v0 }
 0x18e   :  { %v192_v15 = vpop.permute.xlu0 %191 }
 0x18f   :  { %v197_v16 = vsel %vm143_vm2, %v192_v15, 0 }
 0x190   :  { %1360 = vmatpush3.bf16.xpose.msra.mxu0 %v197_v16 }
 0x191   :  { %1371 = vmatprep.subr.bf16.mxu0 %v1627_v0 }
 0x193   :  { %1356 = vmatmul.mubr.msk.bf16.vlgmr.msra.gmra.mrb[0].mxu1 %vm143_vm2, %v1737_v9 }
 0x194   :  { %1367 = vmatprep.mubr.msk.bf16.mxu1 %vm1628_vm0, %v1627_v0 }
 0x197   :  { %1362 = vmatmul.mubr.msk.bf16.vlgmr.msra.gmra.mrb[4].mxu0 %vm143_vm2, %v1740_v12 }
 0x198   :  { %1373 = vmatprep.mubr.msk.bf16.mxu0 %vm1628_vm0, %v1627_v0 }
 0x266   :  { %v184_v17 = vpop.f32.mrb[0].mxu1 }
 0x267   :  { %v1357_v18 = vpop.f32.mrb[1].mxu1  ;;  %v239_v19 = vsel %vm143_vm2, %v184_v17, -inf }
 0x268   :  { %240 = vmax.xlane.f32.xlu1 %v239_v19  ;;  %v187_v20 = vpop.f32.mrb[2].mxu1 }
 0x269   :  { %v1358_v21 = vpop.f32.mrb[3].mxu1 }
 0x26a   :  { %v233_v22 = vpop.f32.mrb[4].mxu0 }
 0x26b   :  { %v1363_v23 = vpop.f32.mrb[5].mxu0  ;;  %v242_v24 = vsel %vm143_vm2, %v233_v22, -inf }
 0x26c   :  { %243 = vmax.xlane.f32.xlu1 %v242_v24  ;;  %v236_v25 = vpop.f32.mrb[6].mxu0 }
 0x26d   :  { %v1364_v26 = vpop.f32.mrb[7].mxu0 }
 0x27d   :  { %269 = vrot.lane.b32.xlu1 %v1737_v9, %s1624_s30 }
 0x281   :  { %318 = vrot.lane.b32.xlu1 %v1740_v12, %s1624_s30  ;;  %s1631_s30 = smov 120  }
 0x285   :  { %370 = vrot.lane.b32.xlu1 %v1737_v9, %s1630_s2 }
 0x2f5   :  { %v241_v27 = vpop.xlane.xlu1 %240 }
 0x2f6   :  { %v245_v28 = vsub.f32 %v184_v17, %v241_v27 }
 0x2f8   :  { %v247_v29 = vmul.f32 1.442695, %v245_v28 }
 0x2f9   :  { %v244_v30 = vpop.xlane.xlu1 %243 }
 0x2fa   :  { %1496 = vpow2.f32 %v247_v29  ;;  %v246_v31 = vsub.f32 %v233_v22, %v244_v30 }
 0x2fc   :  { %v249_v32 = vmul.f32 1.442695, %v246_v31 }
 0x2fd   :  { %v270_v33 = vpop.permute.xlu1 %269 }
 0x2fe   :  { %1498 = vpow2.f32 %v249_v32  ;;  %v276_v34 = vsel %vm274_vm3, %v270_v33, 0 }
 0x2ff   :  { %1366 = vmatpush3.bf16.msra.mxu1 %v276_v34 }
 0x300   :  { %1377 = vmatprep.subr.bf16.mxu1 %v1627_v0 }
 0x301   :  { %v319_v35 = vpop.permute.xlu1 %318 }
 0x302   :  { %v324_v36 = vsel %vm274_vm3, %v319_v35, 0 }
 0x303   :  { %1372 = vmatpush3.bf16.msra.mxu0 %v324_v36 }
 0x304   :  { %v1497_v37 = vpop.eup %1496  ;;  %1383 = vmatprep.subr.bf16.mxu0 %v1627_v0 }
 0x305   :  { %v251_v38 = vsel %vm143_vm2, %v1497_v37, 0.0  ;;  %v371_v41 = vpop.permute.xlu1 %370 }
 0x306   :  { %252 = vadd.xlane.f32.xlu0 %v251_v38  ;;  %v376_v54 = vsel %vm143_vm2, %v371_v41, 0  ;;  %v596_v41 = vld [vmem:[#allocation7 + $0x4] sm:$0xf] }
 0x308   :  { %v1499_v39 = vpop.eup %1498 }
 0x309   :  { %v254_v40 = vsel %vm143_vm2, %v1499_v39, 0.0 }
 0x30a   :  { %255 = vadd.xlane.f32.xlu1 %v254_v40 }
 0x31b   :  { %420 = vrot.lane.b32.xlu1 %v1740_v12, %s1630_s2 }
 0x31c   :  { %368 = vrot.lane.b32.xlu0 %v1737_v9, %s1631_s30 }
 0x31f   :  { %418 = vrot.lane.b32.xlu1 %v1740_v12, %s1631_s30 }
 0x393   :  { %v253_v42 = vpop.xlane.xlu0 %252 }
 0x394   :  { %1500 = vrcp.f32 %v253_v42 }
 0x397   :  { %v256_v43 = vpop.xlane.xlu1 %255  ;;  %v369_v59 = vpop.permute.xlu0 %368 }
 0x398   :  { %1502 = vrcp.f32 %v256_v43 }
 0x39b   :  { %v421_v56 = vpop.permute.xlu1 %420 }
 0x39c   :  { %v426_v58 = vsel %vm143_vm2, %v421_v56, 0 }
 0x39e   :  { %v1501_v44 = vpop.eup %1500 }
 0x39f   :  { %v259_v45 = vmul.f32 %v1501_v44, %v253_v42  ;;  %v419_v60 = vpop.permute.xlu1 %418 }
 0x3a1   :  { %v261_v46 = vsub.f32 2.0, %v259_v45 }
 0x3a2   :  { %v1503_v47 = vpop.eup %1502 }
 0x3a3   :  { %v263_v48 = vmul.f32 %v1501_v44, %v261_v46  ;;  %v260_v49 = vmul.f32 %v1503_v47, %v256_v43  ;;  %v601_v46 = vsel %vm274_vm3, %v596_v41, 0 }
 0x3a5   :  { %v265_v50 = vmul.f32 %v1497_v37, %v263_v48  ;;  %v262_v51 = vsub.f32 2.0, %v260_v49 }
 0x3a7   :  { %v267_v52 = vpack.c.bf16 %v265_v50, %v265_v50  ;;  %v264_v53 = vmul.f32 %v1503_v47, %v262_v51  ;;  %v367_v47 = vld [vmem:[#allocation7] sm:$0xf] }
 0x3a8   :  { %v648_v50 = vsel %vm274_vm3, %v367_v47, 0 }
 0x3a9   :  { %v266_v55 = vmul.f32 %v1499_v39, %v264_v53  ;;  %1368 = vmatmul.mubr.msk.bf16.vlgmr.msra.gmra.mrb[4].mxu1 %vm143_vm2, %v267_v52 }
 0x3aa   :  { %1378 = vmatpush3.bf16.xpose.msra.mxu1 %v376_v54  ;;  %1379 = vmatprep.mubr.msk.bf16.mxu1 %vm1628_vm0, %v1627_v0 }
 0x3ab   :  { %v268_v57 = vpack.c.bf16 %v266_v55, %v266_v55  ;;  %1389 = vmatprep.subr.bf16.mxu1 %v1627_v0 }
 0x3ad   :  { %1374 = vmatmul.mubr.msk.bf16.vlgmr.msra.gmra.mrb[8].mxu0 %vm143_vm2, %v268_v57 }
 0x3ae   :  { %1384 = vmatpush3.bf16.xpose.msra.mxu0 %v426_v58  ;;  %1385 = vmatprep.mubr.msk.bf16.mxu0 %vm1628_vm0, %v1627_v0 }
 0x3af   :  { %1395 = vmatprep.subr.bf16.mxu0 %v1627_v0 }
 0x3b1   :  { %1380 = vmatmul.mubr.msk.bf16.vlgmr.msra.gmra.mrb[8].mxu1 %vm143_vm2, %v369_v59 }
 0x3b2   :  { %1391 = vmatprep.mubr.msk.bf16.mxu1 %vm1628_vm0, %v1627_v0 }
 0x3b5   :  { %1386 = vmatmul.mubr.msk.bf16.vlgmr.msra.gmra.mrb[12].mxu0 %vm143_vm2, %v419_v60 }
 0x3b6   :  { %1397 = vmatprep.mubr.msk.bf16.mxu0 %vm1628_vm0, %v1627_v0 }
 0x47c   :  { %v1787_v61 = vpop.f32.mrb[4].mxu1 }
 0x47d   :  { %v1369_v62 = vpop.f32.mrb[5].mxu1 }
 0x47e   :  { %v315_v63 = vpop.f32.mrb[6].mxu1 }
 0x47f   :  { %v1370_v1 = vpop.f32.mrb[7].mxu1 }
 0x480   :  { %v1789_v2 = vpop.f32.mrb[8].mxu0 }
 0x481   :  { %v366_v3 = vpack.c.bf16 %v1789_v2, %v1787_v61  ;;  %v1375_v4 = vpop.f32.mrb[9].mxu0 }
 0x482   :  { %v363_v5 = vpop.f32.mrb[10].mxu0 }
 0x483   :  { %v1376_v6 = vpop.f32.mrb[11].mxu0 }
 0x484   :  { %v412_v7 = vpop.f32.mrb[8].mxu1 }
 0x485   :  { %v1381_v8 = vpop.f32.mrb[9].mxu1  ;;  %v468_v10 = vsel %vm143_vm2, %v412_v7, -inf }
 0x486   :  { %469 = vmax.xlane.f32.xlu1 %v468_v10  ;;  %v415_v11 = vpop.f32.mrb[10].mxu1 }
 0x487   :  { %v1382_v13 = vpop.f32.mrb[11].mxu1 }
 0x488   :  { %v462_v14 = vpop.f32.mrb[12].mxu0 }
 0x489   :  { %v1387_v15 = vpop.f32.mrb[13].mxu0  ;;  %v471_v16 = vsel %vm143_vm2, %v462_v14, -inf }
 0x48a   :  { %472 = vmax.xlane.f32.xlu0 %v471_v16  ;;  %v465_v17 = vpop.f32.mrb[14].mxu0 }
 0x48b   :  { %v1388_v18 = vpop.f32.mrb[15].mxu0 }
 0x4a0   :  { %546 = vrot.lane.b32.xlu0 %v1740_v12, %s1632_s7 }
 0x4a4   :  { %691 = vrot.lane.b32.xlu0 %v1737_v9, %s1633_s8 }
 0x513   :  { %v470_v19 = vpop.xlane.xlu1 %469 }
 0x514   :  { %v474_v20 = vsub.f32 %v412_v7, %v470_v19 }
 0x516   :  { %v476_v21 = vmul.f32 1.442695, %v474_v20 }
 0x517   :  { %v473_v22 = vpop.xlane.xlu0 %472 }
 0x518   :  { %1504 = vpow2.f32 %v476_v21  ;;  %v475_v23 = vsub.f32 %v462_v14, %v473_v22 }
 0x51a   :  { %v478_v24 = vmul.f32 1.442695, %v475_v23 }
 0x51b   :  { %v547_v25 = vpop.permute.xlu0 %546 }
 0x51c   :  { %1506 = vpow2.f32 %v478_v24  ;;  %v552_v26 = vsel %vm274_vm3, %v547_v25, 0 }
 0x51d   :  { %1396 = vmatpush3.bf16.msra.mxu0 %v552_v26 }
 0x51e   :  { %1407 = vmatprep.subr.bf16.mxu0 %v1627_v0 }
 0x51f   :  { %v692_v4 = vpop.permute.xlu0 %691 }
 0x522   :  { %v1505_v27 = vpop.eup %1504 }
 0x523   :  { %v480_v28 = vsel %vm143_vm2, %v1505_v27, 0.0 }
 0x524   :  { %481 = vadd.xlane.f32.xlu1 %v480_v28 }
 0x526   :  { %v1507_v29 = vpop.eup %1506 }
 0x527   :  { %v483_v30 = vsel %vm143_vm2, %v1507_v29, 0.0 }
 0x528   :  { %484 = vadd.xlane.f32.xlu1 %v483_v30 }
 0x539   :  { %498 = vrot.lane.b32.xlu1 %v1737_v9, %s1632_s7 }
 0x53d   :  { %693 = vrot.lane.b32.xlu1 %v1737_v9, %s1634_s9 }
 0x541   :  { %743 = vrot.lane.b32.xlu1 %v1740_v12, %s1634_s9 }
 0x545   :  { %741 = vrot.lane.b32.xlu1 %v1740_v12, %s1633_s8 }
 0x5b1   :  { %v482_v31 = vpop.xlane.xlu1 %481 }
 0x5b2   :  { %1508 = vrcp.f32 %v482_v31 }
 0x5b5   :  { %v485_v32 = vpop.xlane.xlu1 %484 }
 0x5b6   :  { %1510 = vrcp.f32 %v485_v32 }
 0x5b9   :  { %v499_v33 = vpop.permute.xlu1 %498 }
 0x5ba   :  { %v504_v34 = vsel %vm274_vm3, %v499_v33, 0 }
 0x5bb   :  { %1390 = vmatpush3.bf16.msra.mxu1 %v504_v34 }
 0x5bc   :  { %v1509_v35 = vpop.eup %1508  ;;  %1401 = vmatprep.subr.bf16.mxu1 %v1627_v0 }
 0x5bd   :  { %v488_v36 = vmul.f32 %v1509_v35, %v482_v31  ;;  %v694_v51 = vpop.permute.xlu1 %693 }
 0x5be   :  { %v699_v63 = vsel %vm143_vm2, %v694_v51, 0 }
 0x5bf   :  { %v490_v37 = vsub.f32 2.0, %v488_v36 }
 0x5c0   :  { %v1511_v38 = vpop.eup %1510 }
 0x5c1   :  { %v492_v39 = vmul.f32 %v1509_v35, %v490_v37  ;;  %v489_v40 = vmul.f32 %v1511_v38, %v485_v32  ;;  %v744_v52 = vpop.permute.xlu1 %743 }
 0x5c2   :  { %v749_v53 = vsel %vm143_vm2, %v744_v52, 0 }
 0x5c3   :  { %v494_v42 = vmul.f32 %v1505_v27, %v492_v39  ;;  %v491_v43 = vsub.f32 2.0, %v489_v40 }
 0x5c5   :  { %v496_v44 = vpack.c.bf16 %v494_v42, %v494_v42  ;;  %v493_v45 = vmul.f32 %v1511_v38, %v491_v43  ;;  %v742_v54 = vpop.permute.xlu1 %741 }
 0x5c7   :  { %v495_v48 = vmul.f32 %v1507_v29, %v493_v45  ;;  %1392 = vmatmul.mubr.msk.bf16.vlgmr.msra.gmra.mrb[12].mxu1 %vm143_vm2, %v496_v44 }
 0x5c8   :  { %1402 = vmatpush3.bf16.msra.mxu1 %v601_v46  ;;  %1403 = vmatprep.mubr.msk.bf16.mxu1 %vm1628_vm0, %v1627_v0 }
 0x5c9   :  { %v497_v49 = vpack.c.bf16 %v495_v48, %v495_v48  ;;  %1413 = vmatprep.subr.bf16.mxu1 %v1627_v0 }
 0x5cb   :  { %1398 = vmatmul.mubr.msk.bf16.vlgmr.msra.gmra.mrb[16].mxu0 %vm143_vm2, %v497_v49 }
 0x5cc   :  { %1408 = vmatpush3.bf16.msra.mxu0 %v648_v50  ;;  %1409 = vmatprep.mubr.msk.bf16.mxu0 %vm1628_vm0, %v1627_v0 }
 0x5cd   :  { %1419 = vmatprep.subr.bf16.mxu0 %v1627_v0 }
 0x5d3   :  { %1410 = vmatmul.mubr.msk.bf16.vlgmr.msra.gmra.mrb[20].mxu0 %vm143_vm2, %v366_v3 }
 0x5d4   :  { %1421 = vmatprep.mubr.msk.bf16.mxu0 %vm1628_vm0, %v1627_v0 }
 0x5d5   :  { %1420 = vmatpush3.bf16.xpose.msra.mxu0 %v749_v53 }
 0x5d6   :  { %1431 = vmatprep.subr.bf16.mxu0 %v1627_v0 }
 0x5dc   :  { %1422 = vmatmul.mubr.msk.bf16.vlgmr.msra.gmra.mrb[24].mxu0 %vm143_vm2, %v742_v54 }
 0x5dd   :  { %1433 = vmatprep.mubr.msk.bf16.mxu0 %vm1628_vm0, %v1627_v0 }
 0x69a   :  { %v540_v55 = vpop.f32.mrb[12].mxu1 }
 0x69b   :  { %v1393_v56 = vpop.f32.mrb[13].mxu1 }
 0x69c   :  { %v543_v57 = vpop.f32.mrb[14].mxu1  ;;  %v919_v56 = vld [vmem:[#allocation7 + $0x8] sm:$0xf] }
 0x69d   :  { %v1394_v58 = vpop.f32.mrb[15].mxu1  ;;  %v924_v57 = vsel %vm274_vm3, %v919_v56, 0 }
 0x69e   :  { %v588_v59 = vpop.f32.mrb[16].mxu0 }
 0x69f   :  { %v594_v60 = vpack.c.bf16 %v588_v59, %v540_v55  ;;  %v1399_v61 = vpop.f32.mrb[17].mxu0 }
 0x6a0   :  { %v591_v62 = vpop.f32.mrb[18].mxu0 }
 0x6a1   :  { %v1400_v1 = vpop.f32.mrb[19].mxu0  ;;  %1404 = vmatmul.mubr.msk.bf16.vlgmr.msra.gmra.mrb[16].mxu1 %vm143_vm2, %v594_v60 }
 0x6a2   :  { %1414 = vmatpush3.bf16.xpose.msra.mxu1 %v699_v63  ;;  %1415 = vmatprep.mubr.msk.bf16.mxu1 %vm1628_vm0, %v1627_v0 }
 0x6a3   :  { %1425 = vmatprep.subr.bf16.mxu1 %v1627_v0 }
 0x6a6   :  { %v684_v2 = vpop.f32.mrb[20].mxu0 }
 0x6a7   :  { %v1411_v3 = vpop.f32.mrb[21].mxu0 }
 0x6a8   :  { %v687_v5 = vpop.f32.mrb[22].mxu0 }
 0x6a9   :  { %v1412_v6 = vpop.f32.mrb[23].mxu0  ;;  %1416 = vmatmul.mubr.msk.bf16.vlgmr.msra.gmra.mrb[20].mxu1 %vm143_vm2, %v692_v4 }
 0x6aa   :  { %1427 = vmatprep.mubr.msk.bf16.mxu1 %vm1628_vm0, %v1627_v0 }
 0x6af   :  { %v785_v7 = vpop.f32.mrb[24].mxu0 }
 0x6b0   :  { %v1423_v8 = vpop.f32.mrb[25].mxu0  ;;  %v794_v10 = vsel %vm143_vm2, %v785_v7, -inf }
 0x6b1   :  { %795 = vmax.xlane.f32.xlu1 %v794_v10  ;;  %v788_v11 = vpop.f32.mrb[26].mxu0 }
 0x6b2   :  { %v1424_v13 = vpop.f32.mrb[27].mxu0 }
 0x6c2   :  { %821 = vrot.lane.b32.xlu1 %v1737_v9, %s1635_s10 }
 0x6c6   :  { %971 = vrot.lane.b32.xlu1 %v1737_v9, %s1636_s11 }
 0x6ca   :  { %1021 = vrot.lane.b32.xlu1 %v1740_v12, %s1636_s11 }
 0x6ce   :  { %1019 = vrot.lane.b32.xlu1 %v1740_v12, %s1637_s12 }
 0x73e   :  { %v796_v14 = vpop.xlane.xlu1 %795 }
 0x73f   :  { %v798_v17 = vsub.f32 %v785_v7, %v796_v14 }
 0x741   :  { %v801_v18 = vmul.f32 1.442695, %v798_v17 }
 0x742   :  { %v822_v15 = vpop.permute.xlu1 %821 }
 0x743   :  { %v827_v16 = vsel %vm274_vm3, %v822_v15, 0  ;;  %1512 = vpow2.f32 %v801_v18 }
 0x744   :  { %1426 = vmatpush3.bf16.msra.mxu1 %v827_v16 }
 0x745   :  { %1437 = vmatprep.subr.bf16.mxu1 %v1627_v0 }
 0x746   :  { %v972_v48 = vpop.permute.xlu1 %971 }
 0x747   :  { %v977_v50 = vsel %vm143_vm2, %v972_v48, 0 }
 0x74a   :  { %v1022_v62 = vpop.permute.xlu1 %1021 }
 0x74b   :  { %v1027_v8 = vsel %vm143_vm2, %v1022_v62, 0  ;;  %v1301_v62 = vld [vmem:[%s1918_s4] ss:$0 sm:$0xff] }
 0x74d   :  { %v1513_v28 = vpop.eup %1512 }
 0x74e   :  { %v806_v31 = vsel %vm143_vm2, %v1513_v28, 0.0  ;;  %v1020_v13 = vpop.permute.xlu1 %1019 }
 0x774   :  { %v637_v19 = vpop.f32.mrb[16].mxu1 }
 0x775   :  { %v1845_v20 = vadd.f32 %v684_v2, %v637_v19  ;;  %v1405_v21 = vpop.f32.mrb[17].mxu1 }
 0x776   :  { %v640_v22 = vpop.f32.mrb[18].mxu1 }
 0x777   :  { %v1847_v23 = vadd.f32 %v687_v5, %v640_v22  ;;  %v1406_v24 = vpop.f32.mrb[19].mxu1 }
 0x77c   :  { %v735_v25 = vpop.f32.mrb[20].mxu1 }
 0x77d   :  { %v1417_v26 = vpop.f32.mrb[21].mxu1  ;;  %v791_v27 = vsel %vm143_vm2, %v735_v25, -inf }
 0x77e   :  { %792 = vmax.xlane.f32.xlu0 %v791_v27  ;;  %v738_v29 = vpop.f32.mrb[22].mxu1 }
 0x77f   :  { %v1418_v30 = vpop.f32.mrb[23].mxu1 }
 0x782   :  { %807 = vadd.xlane.f32.xlu0 %v806_v31 }
 0x80b   :  { %v793_v32 = vpop.xlane.xlu0 %792 }
 0x80c   :  { %v797_v33 = vsub.f32 %v735_v25, %v793_v32 }
 0x80e   :  { %v799_v34 = vmul.f32 1.442695, %v797_v33 }
 0x80f   :  { %v808_v37 = vpop.xlane.xlu0 %807 }
 0x810   :  { %1514 = vpow2.f32 %v799_v34 }
 0x811   :  { %1516 = vrcp.f32 %v808_v37 }
 0x81a   :  { %v1515_v35 = vpop.eup %1514 }
 0x81b   :  { %v803_v36 = vsel %vm143_vm2, %v1515_v35, 0.0  ;;  %v1517_v38 = vpop.eup %1516 }
 0x81c   :  { %804 = vadd.xlane.f32.xlu0 %v803_v36  ;;  %v812_v39 = vmul.f32 %v1517_v38, %v808_v37 }
 0x81e   :  { %v814_v40 = vsub.f32 2.0, %v812_v39 }
 0x820   :  { %v816_v41 = vmul.f32 %v1517_v38, %v814_v40 }
 0x822   :  { %v818_v43 = vmul.f32 %v1513_v28, %v816_v41 }
 0x824   :  { %v820_v46 = vpack.c.bf16 %v818_v43, %v818_v43  ;;  %v1197_v43 = vld [vmem:[#allocation7 + $0xc] sm:$0xf] }
 0x832   :  { %869 = vrot.lane.b32.xlu0 %v1740_v12, %s1635_s10 }
 0x836   :  { %969 = vrot.lane.b32.xlu0 %v1737_v9, %s1637_s12 }
 0x8a9   :  { %v805_v42 = vpop.xlane.xlu0 %804 }
 0x8aa   :  { %1518 = vrcp.f32 %v805_v42 }
 0x8ad   :  { %v870_v44 = vpop.permute.xlu0 %869 }
 0x8ae   :  { %v875_v45 = vsel %vm274_vm3, %v870_v44, 0  ;;  %v1202_v44 = vsel %vm274_vm3, %v1197_v43, 0 }
 0x8af   :  { %1432 = vmatpush3.bf16.msra.mxu0 %v875_v45 }
 0x8b0   :  { %1443 = vmatprep.subr.bf16.mxu0 %v1627_v0 }
 0x8b1   :  { %v970_v55 = vpop.permute.xlu0 %969 }
 0x8b2   :  { %1434 = vmatmul.mubr.msk.bf16.vlgmr.msra.gmra.mrb[28].mxu0 %vm143_vm2, %v820_v46 }
 0x8b3   :  { %1445 = vmatprep.mubr.msk.bf16.mxu0 %vm1628_vm0, %v1627_v0 }
 0x8b4   :  { %v1519_v47 = vpop.eup %1518 }
 0x8b5   :  { %v811_v49 = vmul.f32 %v1519_v47, %v805_v42 }
 0x8b7   :  { %v813_v51 = vsub.f32 2.0, %v811_v49 }
 0x8b8   :  { %1444 = vmatpush3.bf16.xpose.msra.mxu0 %v977_v50 }
 0x8b9   :  { %v815_v52 = vmul.f32 %v1519_v47, %v813_v51  ;;  %1455 = vmatprep.subr.bf16.mxu0 %v1627_v0 }
 0x8bb   :  { %v817_v53 = vmul.f32 %v1515_v35, %v815_v52 }
 0x8bd   :  { %v819_v54 = vpack.c.bf16 %v817_v53, %v817_v53 }
 0x8bf   :  { %1428 = vmatmul.mubr.msk.bf16.vlgmr.msra.gmra.mrb[24].mxu1 %vm143_vm2, %v819_v54  ;;  %1446 = vmatmul.mubr.msk.bf16.vlgmr.msra.gmra.mrb[32].mxu0 %vm143_vm2, %v970_v55 }
 0x8c0   :  { %1439 = vmatprep.mubr.msk.bf16.mxu1 %vm1628_vm0, %v1627_v0  ;;  %1457 = vmatprep.mubr.msk.bf16.mxu0 %vm1628_vm0, %v1627_v0 }
 0x8c1   :  { %1438 = vmatpush3.bf16.msra.mxu1 %v924_v57 }
 0x8c2   :  { %1449 = vmatprep.subr.bf16.mxu1 %v1627_v0 }
 0x985   :  { %v911_v58 = vpop.f32.mrb[28].mxu0 }
 0x986   :  { %v1435_v59 = vpop.f32.mrb[29].mxu0 }
 0x987   :  { %v914_v60 = vpop.f32.mrb[30].mxu0 }
 0x988   :  { %v1436_v61 = vpop.f32.mrb[31].mxu0 }
 0x992   :  { %v863_v63 = vpop.f32.mrb[24].mxu1  ;;  %v1013_v1 = vpop.f32.mrb[32].mxu0 }
 0x993   :  { %v917_v2 = vpack.c.bf16 %v911_v58, %v863_v63  ;;  %v1429_v3 = vpop.f32.mrb[25].mxu1  ;;  %v1447_v4 = vpop.f32.mrb[33].mxu0  ;;  %v1069_v5 = vsel %vm143_vm2, %v1013_v1, -inf }
 0x994   :  { %v866_v6 = vpop.f32.mrb[26].mxu1  ;;  %1070 = vmax.xlane.f32.xlu0 %v1069_v5  ;;  %v1016_v7 = vpop.f32.mrb[34].mxu0 }
 0x995   :  { %v1430_v10 = vpop.f32.mrb[27].mxu1  ;;  %1440 = vmatmul.mubr.msk.bf16.vlgmr.msra.gmra.mrb[28].mxu1 %vm143_vm2, %v917_v2  ;;  %v1448_v11 = vpop.f32.mrb[35].mxu0 }
 0x996   :  { %1450 = vmatpush3.bf16.xpose.msra.mxu1 %v1027_v8  ;;  %1451 = vmatprep.mubr.msk.bf16.mxu1 %vm1628_vm0, %v1627_v0 }
 0x997   :  { %1461 = vmatprep.subr.bf16.mxu1 %v1627_v0 }
 0x99d   :  { %1452 = vmatmul.mubr.msk.bf16.vlgmr.msra.gmra.mrb[32].mxu1 %vm143_vm2, %v1020_v13 }
 0x99e   :  { %1463 = vmatprep.mubr.msk.bf16.mxu1 %vm1628_vm0, %v1627_v0 }
 0xa21   :  { %v1071_v14 = vpop.xlane.xlu0 %1070 }
 0xa22   :  { %v1075_v15 = vsub.f32 %v1013_v1, %v1071_v14 }
 0xa24   :  { %v1077_v16 = vmul.f32 1.442695, %v1075_v15 }
 0xa26   :  { %1520 = vpow2.f32 %v1077_v16 }
 0xa30   :  { %v1521_v17 = vpop.eup %1520 }
 0xa31   :  { %v1081_v18 = vsel %vm143_vm2, %v1521_v17, 0.0 }
 0xa32   :  { %1082 = vadd.xlane.f32.xlu0 %v1081_v18 }
 0xa68   :  { %v960_v19 = vpop.f32.mrb[28].mxu1 }
 0xa69   :  { %v967_v21 = vadd.f32 %v960_v19, %v1845_v20  ;;  %v1441_v22 = vpop.f32.mrb[29].mxu1 }
 0xa6a   :  { %v963_v24 = vpop.f32.mrb[30].mxu1 }
 0xa6b   :  { %v1883_v25 = vadd.f32 %v963_v24, %v1847_v23  ;;  %v1442_v26 = vpop.f32.mrb[31].mxu1 }
 0xa70   :  { %v1063_v27 = vpop.f32.mrb[32].mxu1 }
 0xa71   :  { %v1453_v28 = vpop.f32.mrb[33].mxu1  ;;  %v1072_v29 = vsel %vm143_vm2, %v1063_v27, -inf }
 0xa72   :  { %1073 = vmax.xlane.f32.xlu1 %v1072_v29  ;;  %v1066_v30 = vpop.f32.mrb[34].mxu1 }
 0xa73   :  { %v1454_v31 = vpop.f32.mrb[35].mxu1 }
 0xa83   :  { %1099 = vrot.lane.b32.xlu1 %v1737_v9, %s1638_s13 }
 0xabf   :  { %v1083_v32 = vpop.xlane.xlu0 %1082 }
 0xac0   :  { %1522 = vrcp.f32 %v1083_v32 }
 0xaca   :  { %v1523_v33 = vpop.eup %1522 }
 0xacb   :  { %v1089_v20 = vmul.f32 %v1523_v33, %v1083_v32 }
 0xacd   :  { %v1091_v34 = vsub.f32 2.0, %v1089_v20 }
 0xacf   :  { %v1093_v35 = vmul.f32 %v1523_v33, %v1091_v34 }
 0xad1   :  { %v1095_v37 = vmul.f32 %v1521_v17, %v1093_v35 }
 0xad3   :  { %v1097_v41 = vpack.c.bf16 %v1095_v37, %v1095_v37 }
 0xaff   :  { %v1074_v36 = vpop.xlane.xlu1 %1073 }
 0xb00   :  { %v1076_v23 = vsub.f32 %v1063_v27, %v1074_v36 }
 0xb02   :  { %v1079_v38 = vmul.f32 1.442695, %v1076_v23 }
 0xb03   :  { %v1100_v39 = vpop.permute.xlu1 %1099 }
 0xb04   :  { %1524 = vpow2.f32 %v1079_v38  ;;  %v1105_v40 = vsel %vm274_vm3, %v1100_v39, 0 }
 0xb05   :  { %1456 = vmatpush3.bf16.msra.mxu0 %v1105_v40 }
 0xb06   :  { %1467 = vmatprep.subr.bf16.mxu0 %v1627_v0 }
 0xb08   :  { %1458 = vmatmul.mubr.msk.bf16.vlgmr.msra.gmra.mrb[36].mxu0 %vm143_vm2, %v1097_v41 }
 0xb09   :  { %1469 = vmatprep.mubr.msk.bf16.mxu0 %vm1628_vm0, %v1627_v0  ;;  %1468 = vmatpush3.bf16.msra.mxu0 %v1202_v44 }
 0xb0e   :  { %v1525_v9 = vpop.eup %1524 }
 0xb0f   :  { %v1084_v42 = vsel %vm143_vm2, %v1525_v9, 0.0 }
 0xb10   :  { %1085 = vadd.xlane.f32.xlu0 %v1084_v42 }
 0xb26   :  { %1147 = vrot.lane.b32.xlu0 %v1740_v12, %s1638_s13 }
 0xb9d   :  { %v1086_v45 = vpop.xlane.xlu0 %1085 }
 0xb9e   :  { %1526 = vrcp.f32 %v1086_v45 }
 0xba1   :  { %v1148_v46 = vpop.permute.xlu0 %1147 }
 0xba2   :  { %v1153_v47 = vsel %vm274_vm3, %v1148_v46, 0 }
 0xba3   :  { %1462 = vmatpush3.bf16.msra.mxu1 %v1153_v47 }
 0xba8   :  { %v1527_v48 = vpop.eup %1526 }
 0xba9   :  { %v1090_v49 = vmul.f32 %v1527_v48, %v1086_v45 }
 0xbab   :  { %v1092_v50 = vsub.f32 2.0, %v1090_v49 }
 0xbad   :  { %v1094_v0 = vmul.f32 %v1527_v48, %v1092_v50 }
 0xbaf   :  { %v1096_v51 = vmul.f32 %v1525_v9, %v1094_v0 }
 0xbb1   :  { %v1098_v52 = vpack.c.bf16 %v1096_v51, %v1096_v51 }
 0xbb3   :  { %1464 = vmatmul.mubr.msk.bf16.vlgmr.msra.gmra.mrb[36].mxu1 %vm143_vm2, %v1098_v52 }
 0xbdb   :  { %v1141_v53 = vpop.f32.mrb[36].mxu0 }
 0xbdc   :  { %v1459_v12 = vpop.f32.mrb[37].mxu0 }
 0xbdd   :  { %v1144_v54 = vpop.f32.mrb[38].mxu0 }
 0xbde   :  { %v1460_v55 = vpop.f32.mrb[39].mxu0 }
 0xc86   :  { %v1189_v56 = vpop.f32.mrb[36].mxu1 }
 0xc87   :  { %v1195_v57 = vpack.c.bf16 %v1189_v56, %v1141_v53  ;;  %v1465_v58 = vpop.f32.mrb[37].mxu1 }
 0xc88   :  { %v1192_v59 = vpop.f32.mrb[38].mxu1 }
 0xc89   :  { %v1466_v60 = vpop.f32.mrb[39].mxu1  ;;  %1470 = vmatmul.mubr.msk.bf16.vlgmr.msra.gmra.mrb[40].mxu0 %vm143_vm2, %v1195_v57 }
 0xd5c   :  { %v1238_v61 = vpop.f32.mrb[40].mxu0 }
 0xd5d   :  { %v1245_v63 = vadd.f32 %v1238_v61, %v967_v21  ;;  %v1471_v1 = vpop.f32.mrb[41].mxu0 }
 0xd5e   :  { %v1241_v2 = vpop.f32.mrb[42].mxu0 }
 0xd5f   :  { %v1254_v3 = vadd.f32 %v1301_v62, %v1245_v63  ;;  %v1246_v4 = vadd.f32 %v1241_v2, %v1883_v25  ;;  %v1472_v5 = vpop.f32.mrb[43].mxu0 }
 0xd61   :  { %1256 = vst [vmem:[#allocation8] sm:$0xff] %v1254_v3  ;;  %v1255_v6 = vadd.f32 %v1301_v62, %v1246_v4 }
 0xd63   :  { %1257 = vst [vmem:[#allocation8 + $0x8] sm:$0xff] %v1255_v6 }
 0xd64   :  { %1605 = shalt.err (!%p1602_p0)
}
 0xd65   :  { %s1606_s19 = scalar_lea.hbm %s1919_s5, 256 }
 0xd66   :  { %p1607_p1 = scmp.ne.s32.totalorder %s1919_s5, %s1606_s19  ;;  %p1610_p2 = scmp.lt.u32.totalorder %s1606_s19, %s1919_s5 }
 0xd68   :  { %p1612_p3 = pnand %p1610_p2, %p1607_p1 }
 0xd6a   :  { %1615 = shalt.err (!%p1612_p3)
}
 0xd6b   :  { %s1640_s25 = smov 128   ;;  %s1641_s26 = smov 8  }
 0xd6c   :  { %1269 = dma.vmem_to_hbm [thread:$0]  %s1264_s1, 256, %s1919_s5, [#allocation4], %s1640_s25, %s1640_s25, %s1641_s26  }
 0xd6d   :  { %1620 = dma.done.wait [#allocation4], 256  }
 0xd6e   :  { %1621 = vsyncadd [#allocation4], 4294967040 }
 0xd6f   :  { %1273 = vsyncpa [#allocation3], 1 }
 0xd70   :  { %1274 = vsyncpa [#allocation6], 1 }
 0xd71   :  { %1275 = vsyncpa [#allocation4], 1 }

</bundles_post_ra>
